<compile_context>
chip_gen: v7x
topology: tpu7x:2x2x1
jax: 0.10.0
libtpu: 0.0.40
codegen_flags: <defaults>
</compile_context>

<pallas_src>
import functools
import math

import jax
import jax.numpy as jnp
from jax.experimental import pallas as pl
from jax.experimental.pallas import tpu as pltpu


# ---------------------------------------------------------------------------
# CTransformer.forward == identity.  No kernel, no HBM traffic.
# ---------------------------------------------------------------------------
def ctransformer_forward(x: jax.Array) -> jax.Array:
    """Exact CTransformer.forward semantics: returns x unchanged (no copy)."""
    return x


# ---------------------------------------------------------------------------
# PositionalEncoding buffer: deterministic sinusoidal table, kept 2D (L, E).
# (The torch (L, 1, E) shape is recreated by the wrapper where needed.)
# ---------------------------------------------------------------------------
def make_positional_encoding(embedding_size: int, max_len: int = 5000) -> jax.Array:
    position = jnp.arange(0, max_len, dtype=jnp.float32)[:, None]            # (L, 1)
    div_term = jnp.exp(
        jnp.arange(0, embedding_size, 2, dtype=jnp.float32)
        * (-math.log(10000.0) / embedding_size)
    )                                                                         # (E/2,)
    pe = jnp.zeros((max_len, embedding_size), dtype=jnp.float32)
    pe = pe.at[:, 0::2].set(jnp.sin(position * div_term))
    pe = pe.at[:, 1::2].set(jnp.cos(position * div_term))
    return pe                                                                 # (L, E)


# ---------------------------------------------------------------------------
# VMEM budget for the total double-buffered working set (all inputs + output).
# Conservative default fits v5e's 16 MiB scoped-VMEM default with headroom;
# best-effort per-generation bump via get_tpu_info (128 MiB v5e/v6e, 64 MiB v7x).
# ---------------------------------------------------------------------------
def _ws_budget_bytes() -> int:
    budget = 9 << 20
    try:
        cap = int(getattr(pltpu.get_tpu_info(), "vmem_capacity_bytes", 0) or 0)
        if cap >= (96 << 20):      # v5e / v6e class: 128 MiB physical VMEM
            budget = 14 << 20
        elif cap >= (48 << 20):    # v7x class: 64 MiB physical VMEM
            budget = 10 << 20
    except Exception:
        pass
    return budget


def _vmem_limit_for(ws_bytes: int) -> int:
    # Explicit scoped-VMEM limit: working set + headroom for Mosaic internals,
    # clamped so it is valid on every generation (v7x physical is 64 MiB).
    return int(max(16 << 20, min(40 << 20, ws_bytes + (8 << 20))))


# ---------------------------------------------------------------------------
# Kernels.
# ---------------------------------------------------------------------------
def _pe_add_flat_kernel(x_ref, pe_ref, o_ref, *, nb: int):
    # x_ref/o_ref: (ts, nb*E)   pe_ref: (ts, E)   with E % 128 == 0.
    pe = pe_ref[...]
    if nb > 1:
        # Lane-aligned replication across the nb batch tiles: pure vreg copies.
        pe = jnp.concatenate([pe] * nb, axis=-1)
    o_ref[...] = (x_ref[...] + pe).astype(o_ref.dtype)


def _pe_add_3d_kernel(x_ref, pe_ref, o_ref):
    # x_ref/o_ref: (ts, B, E)   pe_ref: (ts, 1, E) -> within-tile sublane bcast.
    o_ref[...] = (x_ref[...] + pe_ref[...]).astype(o_ref.dtype)


# ---------------------------------------------------------------------------
# PositionalEncoding.forward: x (S, B, E) + pe[:S] (broadcast over batch).
# out_dtype=None reproduces the torch promotion (f32 buffer => f32 output);
# pass out_dtype=x.dtype for a bandwidth-saving bf16-out variant.
# ---------------------------------------------------------------------------
def positional_encoding_forward(x: jax.Array, pe: jax.Array, out_dtype=None) -> jax.Array:
    S, B, E = x.shape
    assert pe.ndim == 2 and pe.shape[1] == E and pe.shape[0] >= S
    pe_s = pe[:S]                                            # (S, E) glue slice
    if out_dtype is None:
        out_dtype = jnp.result_type(x.dtype, pe.dtype)       # torch buffer promotion

    in_sz = jnp.dtype(x.dtype).itemsize
    out_sz = jnp.dtype(out_dtype).itemsize
    pe_sz = jnp.dtype(pe.dtype).itemsize
    budget = _ws_budget_bytes()

    lane_dense = (E % 128 == 0)
    # TODO(synk): when E % 128 != 0 but (B*E) % 128 == 0, a flat path with an
    #             unaligned in-kernel pe concat is possible; we take the 3-D
    #             fallback there to keep lowering simple and robust.

    if lane_dense:
        # ----- flat, lane-dense path: x viewed as (S, B*E) -------------------
        def per_row(nb):  # double-buffered bytes per sequence row
            return 2 * nb * E * (in_sz + out_sz) + 2 * E * pe_sz

        unit = 32                      # second-minor granule safe for f32/bf16/i8
        nb = B                         # batches per lane block (lane width nb*E)
        while nb > 1 and per_row(nb) * min(S, unit) > budget:
            nb -= 1
        while B % nb != 0:             # keep blocks exactly aligned to batch rows
            nb -= 1

        rows = max(1, budget // per_row(nb))
        if rows >= S:
            ts = S
            if S >= 2 * unit:          # keep >=2 seq steps for the v7x 2-TC split
                ts = ((S + 1) // 2 + unit - 1) // unit * unit
        else:
            ts = max(unit, (rows // unit) * unit)
        ts = min(ts, S)                # ts == S (full extent) is always legal

        vmem_limit = _vmem_limit_for(ts * per_row(nb))
        x_flat = x.reshape(S, B * E)   # contiguous trailing-dim reshape: free

        grid = (pl.cdiv(S, ts), pl.cdiv(B, nb))
        out_flat = pl.pallas_call(
            functools.partial(_pe_add_flat_kernel, nb=nb),
            out_shape=jax.ShapeDtypeStruct((S, B * E), out_dtype),
            grid=grid,
            in_specs=[
                pl.BlockSpec((ts, nb * E), lambda s, b: (s, b)),
                pl.BlockSpec((ts, E), lambda s, b: (s, 0)),
            ],
            out_specs=pl.BlockSpec((ts, nb * E), lambda s, b: (s, b)),
            compiler_params=pltpu.CompilerParams(
                # TODO(synk): verify on v7x that "parallel" shards across both
                # TensorCores; if not, switch the leading axis to CORE_PARALLEL.
                dimension_semantics=("parallel", "parallel"),
                vmem_limit_bytes=vmem_limit,
            ),
        )(x_flat, pe_s)
        return out_flat.reshape(S, B, E)

    # ----- 3-D fallback path (E not lane-aligned): pe fed as (S, 1, E) -------
    per_row = 2 * B * E * (in_sz + out_sz) + 2 * E * pe_sz
    rows = max(1, budget // per_row)
    ts = min(S, rows)
    if ts >= S and S >= 16:
        ts = pl.cdiv(S, 2)             # >=2 grid steps for the v7x 2-TC split
    vmem_limit = _vmem_limit_for(ts * per_row)

    pe_3d = pe_s[:, None, :]           # (S, 1, E): torch buffer layout
    grid = (pl.cdiv(S, ts),)
    return pl.pallas_call(
        _pe_add_3d_kernel,
        out_shape=jax.ShapeDtypeStruct((S, B, E), out_dtype),
        grid=grid,
        in_specs=[
            pl.BlockSpec((ts, B, E), lambda s: (s, 0, 0)),
            pl.BlockSpec((ts, 1, E), lambda s: (s, 0, 0)),
        ],
        out_specs=pl.BlockSpec((ts, B, E), lambda s: (s, 0, 0)),
        compiler_params=pltpu.CompilerParams(
            dimension_semantics=("parallel",),
            vmem_limit_bytes=vmem_limit,
        ),
    )(x, pe_3d)


if __name__ == "__main__":
    key = jax.random.PRNGKey(0)
    k1, k2 = jax.random.split(key)

    # --- CTransformer.forward: identity, no kernel launched ------------------
    SEQ, BATCH, EMBED = 8, 2, 32
    x1 = jax.random.normal(k1, (SEQ, BATCH, EMBED), dtype=jnp.float32)
    y = ctransformer_forward(x1)
    jax.block_until_ready(y)
    assert y.shape == x1.shape and y.dtype == x1.dtype
    assert bool(jnp.array_equal(y, x1)), "identity forward mismatch"

    # --- PositionalEncoding: 3-D fallback path (E=32 not lane-aligned) -------
    pe32 = make_positional_encoding(EMBED)
    z1 = positional_encoding_forward(x1, pe32)
    jax.block_until_ready(z1)
    z1_ref = x1 + pe32[:SEQ][:, None, :]
    assert z1.dtype == jnp.float32
    assert bool(jnp.allclose(z1, z1_ref, atol=1e-6)), "PE mismatch (3D path, f32)"

    # --- PositionalEncoding: lane-dense flat path (E=128) --------------------
    SEQ2, BATCH2, EMBED2 = 16, 2, 128
    x2 = jax.random.normal(k2, (SEQ2, BATCH2, EMBED2), dtype=jnp.float32)
    pe128 = make_positional_encoding(EMBED2)
    z2 = positional_encoding_forward(x2, pe128)
    jax.block_until_ready(z2)
    z2_ref = x2 + pe128[:SEQ2][:, None, :]
    assert z2.dtype == jnp.float32
    assert bool(jnp.allclose(z2, z2_ref, atol=1e-6)), "PE mismatch (flat path, f32)"

    # --- bf16 input, default torch-like f32 promotion ------------------------
    x2b = x2.astype(jnp.bfloat16)
    z3 = positional_encoding_forward(x2b, pe128)
    jax.block_until_ready(z3)
    z3_ref = x2b.astype(jnp.float32) + pe128[:SEQ2][:, None, :]
    assert z3.dtype == jnp.float32
    assert bool(jnp.allclose(z3, z3_ref, atol=1e-2)), "PE mismatch (flat path, bf16->f32)"

    # --- optional bandwidth-saving bf16 output path ---------------------------
    z4 = positional_encoding_forward(x2b, pe128, out_dtype=jnp.bfloat16)
    jax.block_until_ready(z4)
    assert z4.dtype == jnp.bfloat16
    assert bool(jnp.allclose(z4.astype(jnp.float32), z3_ref, atol=1e-1)), \
        "PE mismatch (flat path, bf16 out)"

    print("KERNEL_OK")
</pallas_src>

<mosaic_0001>
module attributes {stable_mosaic.version = 11 : i64} {
  func.func @_pe_add_3d_kernel(%arg0: i32, %arg1: memref<8x2x32xf32, #tpu.memory_space<vmem>>, %arg2: memref<8x1x32xf32, #tpu.memory_space<vmem>>, %arg3: memref<8x2x32xf32, #tpu.memory_space<vmem>>) attributes {dimension_semantics = [#tpu.dimension_semantics<parallel>], iteration_bounds = array<i64: 1>, scalar_prefetch = 0 : i64, scratch_operands = 0 : i64, tpu.core_type = #tpu.core_type<tc>, window_params = [{transform_indices = @transform_0, window_bounds = array<i64: 8, 2, 32>}, {transform_indices = @transform_1, window_bounds = array<i64: 8, 1, 32>}, {transform_indices = @transform_2, window_bounds = array<i64: 8, 2, 32>}]} {
    %c0 = arith.constant 0 : index
    %c0_0 = arith.constant 0 : index
    %c0_1 = arith.constant 0 : index
    %0 = vector.load %arg1[%c0, %c0_0, %c0_1] : memref<8x2x32xf32, #tpu.memory_space<vmem>>, vector<8x2x32xf32>
    %c0_2 = arith.constant 0 : index
    %c0_3 = arith.constant 0 : index
    %c0_4 = arith.constant 0 : index
    %1 = vector.load %arg2[%c0_2, %c0_3, %c0_4] : memref<8x1x32xf32, #tpu.memory_space<vmem>>, vector<8x1x32xf32>
    %2 = vector.broadcast %1 : vector<8x1x32xf32> to vector<8x2x32xf32>
    %3 = arith.addf %0, %2 : vector<8x2x32xf32>
    %c0_5 = arith.constant 0 : index
    %c0_6 = arith.constant 0 : index
    %c0_7 = arith.constant 0 : index
    %4 = vector.load %arg3[%c0_5, %c0_6, %c0_7] : memref<8x2x32xf32, #tpu.memory_space<vmem>>, vector<8x2x32xf32>
    tpu.vector_store %arg3[%c0_5, %c0_6, %c0_7], %3 {strides = array<i32>} : memref<8x2x32xf32, #tpu.memory_space<vmem>>, vector<8x2x32xf32>,
    return
  }
  func.func @transform_0(%arg0: i32) -> (i32, i32, i32) {
    %c0_i32 = arith.constant 0 : i32
    %c0_i32_0 = arith.constant 0 : i32
    %c0_i32_1 = arith.constant 0 : i32
    return %arg0, %c0_i32, %c0_i32_0 : i32, i32, i32
  }
  func.func @transform_1(%arg0: i32) -> (i32, i32, i32) {
    %c0_i32 = arith.constant 0 : i32
    %c0_i32_0 = arith.constant 0 : i32
    %c0_i32_1 = arith.constant 0 : i32
    return %arg0, %c0_i32, %c0_i32_0 : i32, i32, i32
  }
  func.func @transform_2(%arg0: i32) -> (i32, i32, i32) {
    %c0_i32 = arith.constant 0 : i32
    %c0_i32_0 = arith.constant 0 : i32
    %c0_i32_1 = arith.constant 0 : i32
    return %arg0, %c0_i32, %c0_i32_0 : i32, i32, i32
  }
}

</mosaic_0001>

<bundles_post_ra>
// kernel: tpu_custom_call.1
= control target key start
LH: loop header
LB: loop body
LE: loop exit
PB: predicated region body
PF: predicated region fallthrough
CT: control target
= control target key end

     0   :  { %7 = vsyncpa [#allocation3], 0  ;;  %s301_s0 = inlined_call_operand.hbm [shape: f32[8,2,32], index: 0, kind: input, shape index: {}]   ;;  %s302_s1 = inlined_call_operand.hbm [shape: f32[8,1,32], index: 1, kind: input, shape index: {}]   ;;  %s303_s2 = inlined_call_operand.hbm [shape: f32[8,2,32], index: 2, kind: output, shape index: {}]  }
   0x1   :  { %8 = vsyncpa [#allocation6], 0 }
   0x2   :  { %9 = vsyncpa [#allocation4], 0  ;;  %s226_s9 = smov [#allocation2]   ;;  %s154_s13 = scalar_lea.hbm %s301_s0, 256 }
   0x3   :  { %s15_s10 = sshll.u32 %s226_s9, 4  ;;  %p155_p0 = scmp.ne.s32.totalorder %s301_s0, %s154_s13  ;;  %s16_s10 = int_to_ptr.vmem [resolvable:$true] %s15_s10 }
   0x4   :  { %p158_p1 = scmp.lt.u32.totalorder %s154_s13, %s301_s0 }
   0x6   :  { %p160_p2 = pnand %p158_p1, %p155_p0 }
   0x8   :  { %163 = shalt.err (!%p160_p2)
}
   0x9   :  { %s164_s18 = scalar_lea.vmem %s16_s10, 256  ;;  %p169_p4 = scmp.lt.s32.totalorder %s16_s10, %s16_s10 }
   0xa   :  { %p165_p3 = scmp.ne.s32.totalorder %s16_s10, %s164_s18  ;;  %p170_p5 = scmp.lt.s32.totalorder %s164_s18, %s164_s18 }
   0xc   :  { %p171_p6 = por %p170_p5, %p169_p4 }
   0xe   :  { %p172_p7 = pnand %p171_p6, %p165_p3 }
  0x10   :  { %175 = shalt.err (!%p172_p7)
}
  0x11   :  { %s227_s19 = smov 32   ;;  %s228_s20 = smov 2  }
  0x12   :  { %21 = dma.hbm_to_vmem [thread:$0]  %s301_s0, 256, %s16_s10, [#allocation3], %s227_s19, %s227_s19, %s228_s20  }
  0x13   :  { %s229_s23 = smov [#allocation5]   ;;  %s176_s27 = scalar_lea.hbm %s302_s1, 128 }
  0x14   :  { %s27_s24 = sshll.u32 %s229_s23, 4  ;;  %p177_p8 = scmp.ne.s32.totalorder %s302_s1, %s176_s27  ;;  %s28_s24 = int_to_ptr.vmem [resolvable:$true] %s27_s24 }
  0x15   :  { %p180_p9 = scmp.lt.u32.totalorder %s176_s27, %s302_s1 }
  0x17   :  { %p182_p10 = pnand %p180_p9, %p177_p8 }
  0x19   :  { %185 = shalt.err (!%p182_p10)
}
  0x1a   :  { %s186_s4 = scalar_lea.vmem %s28_s24, 128  ;;  %p191_p12 = scmp.lt.s32.totalorder %s28_s24, %s28_s24 }
  0x1b   :  { %p187_p11 = scmp.ne.s32.totalorder %s28_s24, %s186_s4  ;;  %p192_p13 = scmp.lt.s32.totalorder %s186_s4, %s186_s4 }
  0x1d   :  { %p193_p0 = por %p192_p13, %p191_p12 }
  0x1f   :  { %p194_p1 = pnand %p193_p0, %p187_p11 }
  0x21   :  { %197 = shalt.err (!%p194_p1)
}
  0x22   :  { %s230_s0 = smov 16   ;;  %s231_s5 = smov 1  }
  0x23   :  { %33 = dma.hbm_to_vmem [thread:$0]  %s302_s1, 128, %s28_s24, [#allocation6], %s230_s0, %s230_s0, %s231_s5  }
  0x24   :  { %220 = dma.done.wait [#allocation3], 256  }
  0x25   :  { %221 = vsyncadd [#allocation3], 4294967040 }
  0x26   :  { %222 = dma.done.wait [#allocation6], 128  }
  0x27   :  { %223 = vsyncadd [#allocation6], 4294967168  ;;  %vm112_vm0 = vcmask 254976   ;;  %s232_s8 = smov [#allocation7]   ;;  %v40_v0 = vld [vmem:[#allocation2] sm:$0x3] }
  0x28   :  { %s275_s9 = sshll.u32 %s232_s8, 4  ;;  %v139_v1 = vld [vmem:[#allocation5] ss:$0 sm:$0xff]  ;;  %v41_v2 = vld [vmem:[#allocation2 + $0x2] sm:$0x3]  ;;  %s127_s9 = int_to_ptr.vmem [resolvable:$true] %s275_s9 }
  0x29   :  { %v104_v3 = vadd.f32 %v139_v1, %v40_v0  ;;  %v140_v4 = vld [vmem:[#allocation5 + $0x1] ss:$0 sm:$0xff]  ;;  %v42_v5 = vld [vmem:[#allocation2 + $0x4] sm:$0x3]  ;;  %v141_v6 = vld [vmem:[#allocation5 + $0x2] ss:$0 sm:$0xff]  ;;  %p203_p3 = scmp.lt.s32.totalorder %s127_s9, %s127_s9 }
  0x2a   :  { %v105_v7 = vadd.f32 %v140_v4, %v41_v2  ;;  %v106_v8 = vadd.f32 %v141_v6, %v42_v5  ;;  %v43_v9 = vld [vmem:[#allocation2 + $0x6] sm:$0x3]  ;;  %v142_v10 = vld [vmem:[#allocation5 + $0x3] ss:$0 sm:$0xff]  ;;  %v44_v11 = vld [vmem:[#allocation2 + $0x8] sm:$0x3] }
  0x2b   :  { %113 = vst.msk [vmem:[#allocation7] sm:$0x3] %vm112_vm0, %v104_v3  ;;  %v107_v12 = vadd.f32 %v142_v10, %v43_v9  ;;  %v143_v13 = vld [vmem:[#allocation5 + $0x4] ss:$0 sm:$0xff]  ;;  %v45_v14 = vld [vmem:[#allocation2 + $0xa] sm:$0x3] }
  0x2c   :  { %v144_v15 = vld [vmem:[#allocation5 + $0x5] ss:$0 sm:$0xff]  ;;  %114 = vst.msk [vmem:[#allocation7 + $0x2] sm:$0x3] %vm112_vm0, %v105_v7  ;;  %115 = vst.msk [vmem:[#allocation7 + $0x4] sm:$0x3] %vm112_vm0, %v106_v8  ;;  %v108_v16 = vadd.f32 %v143_v13, %v44_v11 }
  0x2d   :  { %v109_v17 = vadd.f32 %v144_v15, %v45_v14  ;;  %v46_v18 = vld [vmem:[#allocation2 + $0xc] sm:$0x3]  ;;  %v145_v19 = vld [vmem:[#allocation5 + $0x6] ss:$0 sm:$0xff]  ;;  %v47_v20 = vld [vmem:[#allocation2 + $0xe] sm:$0x3] }
  0x2e   :  { %116 = vst.msk [vmem:[#allocation7 + $0x6] sm:$0x3] %vm112_vm0, %v107_v12  ;;  %v110_v21 = vadd.f32 %v145_v19, %v46_v18  ;;  %v146_v22 = vld [vmem:[#allocation5 + $0x7] ss:$0 sm:$0xff]  ;;  %117 = vst.msk [vmem:[#allocation7 + $0x8] sm:$0x3] %vm112_vm0, %v108_v16 }
  0x2f   :  { %118 = vst.msk [vmem:[#allocation7 + $0xa] sm:$0x3] %vm112_vm0, %v109_v17  ;;  %v111_v23 = vadd.f32 %v146_v22, %v47_v20  ;;  %s198_s1 = scalar_lea.vmem %s127_s9, 256 }
  0x30   :  { %119 = vst.msk [vmem:[#allocation7 + $0xc] sm:$0x3] %vm112_vm0, %v110_v21  ;;  %p199_p2 = scmp.ne.s32.totalorder %s127_s9, %s198_s1  ;;  %p204_p4 = scmp.lt.s32.totalorder %s198_s1, %s198_s1 }
  0x31   :  { %120 = vst.msk [vmem:[#allocation7 + $0xe] sm:$0x3] %vm112_vm0, %v111_v23 }
  0x32   :  { %p205_p5 = por %p204_p4, %p203_p3 }
  0x34   :  { %p206_p6 = pnand %p205_p5, %p199_p2 }
  0x36   :  { %209 = shalt.err (!%p206_p6)
}
  0x37   :  { %s210_s12 = scalar_lea.hbm %s303_s2, 256 }
  0x38   :  { %p211_p7 = scmp.ne.s32.totalorder %s303_s2, %s210_s12  ;;  %p214_p8 = scmp.lt.u32.totalorder %s210_s12, %s303_s2 }
  0x3a   :  { %p216_p9 = pnand %p214_p8, %p211_p7 }
  0x3c   :  { %219 = shalt.err (!%p216_p9)
}
  0x3d   :  { %132 = dma.vmem_to_hbm [thread:$0]  %s127_s9, 256, %s303_s2, [#allocation4], %s227_s19, %s227_s19, %s228_s20  }
  0x3e   :  { %224 = dma.done.wait [#allocation4], 256  }
  0x3f   :  { %225 = vsyncadd [#allocation4], 4294967040 }
  0x40   :  { %136 = vsyncpa [#allocation3], 1 }
  0x41   :  { %137 = vsyncpa [#allocation6], 1 }
  0x42   :  { %138 = vsyncpa [#allocation4], 1 }

</bundles_post_ra>
